<compile_context>
chip_gen: v6e
topology: v6e:2x2x1
jax: 0.10.0
libtpu: 0.0.40
codegen_flags: <defaults>
</compile_context>

<pallas_src>
import jax
import jax.numpy as jnp
from jax.experimental import pallas as pl
from jax.experimental.pallas import tpu as pltpu


def _prox_l2_kernel(coef_ref, x_ref, f_ref, o_ref):
    # coef_ref: SMEM f32[2] = [1/(1+lam), lam/(1+lam)]
    b = coef_ref[0]
    a = coef_ref[1]
    # x/f tiles promote to f32 against the f32 scalars; cast back at the store.
    o_ref[...] = (x_ref[...] * b + f_ref[...] * a).astype(o_ref.dtype)


def _vmem_capacity_bytes():
    try:
        return int(pltpu.get_tpu_info().vmem_capacity_bytes)
    except Exception:
        return 64 << 20  # conservative fallback (v7x-sized VMEM)


def proximal_l2(x, f, clambda):
    """Elementwise proximal L2 operator: (x + clambda*f) / (1 + clambda)."""
    assert x.shape == f.shape and x.dtype == f.dtype
    orig_shape = x.shape
    total = x.size
    itemsize = jnp.dtype(x.dtype).itemsize
    # Sublane pack factor for this dtype (rows per packed sublane group).
    pack = {1: 32, 2: 16, 4: 8}.get(itemsize, 8)

    # --- pad flattened length to a multiple of pack*128 ----------------------
    # Guarantees a lane-dense tiled layout for every element count (no
    # degenerate single-block fallback); costs < pack*128 elements of traffic.
    quantum = pack * 128
    padded_total = ((total + quantum - 1) // quantum) * quantum
    xf = x.reshape(-1)
    ff = f.reshape(-1)
    if padded_total != total:
        padn = padded_total - total
        xf = jnp.pad(xf, (0, padn))
        ff = jnp.pad(ff, (0, padn))

    # --- lane-dense 2-D layout: last dim as wide a multiple of 128 as possible
    cols = 128
    for c in (8192, 4096, 2048, 1024, 512, 256, 128):
        if padded_total % c == 0:
            cols = c
            break
    rows = padded_total // cols

    # --- generation-aware block-row choice ------------------------------------
    vmem_cap = _vmem_capacity_bytes()
    # ~vmem/16 per block: 3 arrays x 2 pipeline buffers ~= 3/8 of VMEM.
    target_block_bytes = min(vmem_cap // 16, 6 << 20)
    bytes_per_row = cols * itemsize
    target_rows = max(pack, target_block_bytes // bytes_per_row)

    if rows < 4 * pack:
        # Tiny array: single full-extent block (block dims == array dims).
        tr = rows
    elif rows <= target_rows:
        # Fits one block, but keep >= ~4 grid steps so the pipeline overlaps
        # DMA-in / compute / DMA-out and both v7x TCs get a share.
        tr = max(pack, ((rows + 3) // 4 // pack) * pack)
    else:
        tr = (target_rows // pack) * pack
    grid = (pl.cdiv(rows, tr),)

    block_bytes = tr * cols * itemsize
    # 3 arrays x 2 pipeline buffers + headroom for Mosaic internal scratch,
    # but never more than ~3/4 of physical VMEM (keeps v7x's 64 MiB safe).
    vmem_limit = int(min(vmem_cap * 3 // 4, max(32 << 20, 8 * block_bytes)))

    x2 = xf.reshape(rows, cols)
    f2 = ff.reshape(rows, cols)

    # Scalar coefficients in f32 via jnp ops (safe for traced clambda).
    lam = jnp.asarray(clambda, dtype=jnp.float32)
    inv = 1.0 / (1.0 + lam)
    coefs = jnp.stack([inv, lam * inv])

    out2 = pl.pallas_call(
        _prox_l2_kernel,
        out_shape=jax.ShapeDtypeStruct((rows, cols), x.dtype),
        grid=grid,
        in_specs=[
            pl.BlockSpec(memory_space=pltpu.MemorySpace.SMEM),   # [b, a] scalars
            pl.BlockSpec((tr, cols), lambda i: (i, 0)),          # x tile
            pl.BlockSpec((tr, cols), lambda i: (i, 0)),          # f tile
        ],
        out_specs=pl.BlockSpec((tr, cols), lambda i: (i, 0)),
        compiler_params=pltpu.CompilerParams(
            dimension_semantics=("parallel",),
            vmem_limit_bytes=vmem_limit),
        cost_estimate=pl.CostEstimate(
            flops=2 * padded_total, transcendentals=0,
            bytes_accessed=3 * padded_total * itemsize),
    )(coefs, x2, f2)

    out = out2.reshape(-1)
    if padded_total != total:
        out = out[:total]
    return out.reshape(orig_shape)


if __name__ == "__main__":
    key = jax.random.PRNGKey(0)
    kx, kf = jax.random.split(key)

    # Small NCHW shapes consistent with an image prox operator.
    x = jax.random.normal(kx, (2, 4, 16, 16), dtype=jnp.float32)
    f = jax.random.normal(kf, (2, 4, 16, 16), dtype=jnp.float32)
    clambda = 0.5

    out = jax.block_until_ready(proximal_l2(x, f, clambda))
    ref = (x + clambda * f) / (1.0 + clambda)
    assert out.shape == x.shape and out.dtype == x.dtype
    assert jnp.allclose(out, ref, atol=1e-5, rtol=1e-5)

    # Exercise the padded (non-multiple-of-128) path as well.
    xr = jax.random.normal(kx, (3, 5, 7, 11), dtype=jnp.float32)
    fr = jax.random.normal(kf, (3, 5, 7, 11), dtype=jnp.float32)
    outr = jax.block_until_ready(proximal_l2(xr, fr, 0.25))
    refr = (xr + 0.25 * fr) / 1.25
    assert jnp.allclose(outr, refr, atol=1e-5, rtol=1e-5)

    print("KERNEL_OK")
</pallas_src>

<mosaic_0001>
module attributes {stable_mosaic.version = 11 : i64} {
  func.func @_prox_l2_kernel(%arg0: i32, %arg1: memref<2xf32, #tpu.memory_space<smem>>, %arg2: memref<1x2048xf32, #tpu.memory_space<vmem>>, %arg3: memref<1x2048xf32, #tpu.memory_space<vmem>>, %arg4: memref<1x2048xf32, #tpu.memory_space<vmem>>) attributes {dimension_semantics = [#tpu.dimension_semantics<parallel>], iteration_bounds = array<i64: 1>, scalar_prefetch = 0 : i64, scratch_operands = 0 : i64, tpu.core_type = #tpu.core_type<tc>, window_params = [{transform_indices = @transform_0, window_bounds = array<i64: 2>}, {transform_indices = @transform_1, window_bounds = array<i64: 1, 2048>}, {transform_indices = @transform_2, window_bounds = array<i64: 1, 2048>}, {transform_indices = @transform_3, window_bounds = array<i64: 1, 2048>}]} {
    %c0 = arith.constant 0 : index
    %0 = memref.load %arg1[%c0] : memref<2xf32, #tpu.memory_space<smem>>
    %c1 = arith.constant 1 : index
    %1 = memref.load %arg1[%c1] : memref<2xf32, #tpu.memory_space<smem>>
    %c0_0 = arith.constant 0 : index
    %c0_1 = arith.constant 0 : index
    %2 = vector.load %arg2[%c0_0, %c0_1] : memref<1x2048xf32, #tpu.memory_space<vmem>>, vector<1x2048xf32>
    %3 = vector.broadcast %0 : f32 to vector<1x2048xf32>
    %4 = arith.mulf %2, %3 : vector<1x2048xf32>
    %c0_2 = arith.constant 0 : index
    %c0_3 = arith.constant 0 : index
    %5 = vector.load %arg3[%c0_2, %c0_3] : memref<1x2048xf32, #tpu.memory_space<vmem>>, vector<1x2048xf32>
    %6 = vector.broadcast %1 : f32 to vector<1x2048xf32>
    %7 = arith.mulf %5, %6 : vector<1x2048xf32>
    %8 = arith.addf %4, %7 : vector<1x2048xf32>
    %c0_4 = arith.constant 0 : index
    %c0_5 = arith.constant 0 : index
    %9 = vector.load %arg4[%c0_4, %c0_5] : memref<1x2048xf32, #tpu.memory_space<vmem>>, vector<1x2048xf32>
    tpu.vector_store %arg4[%c0_4, %c0_5], %8 {strides = array<i32>} : memref<1x2048xf32, #tpu.memory_space<vmem>>, vector<1x2048xf32>,
    return
  }
  func.func @transform_0(%arg0: i32) -> i32 {
    %c0_i32 = arith.constant 0 : i32
    %c0_i32_0 = arith.constant 0 : i32
    return %c0_i32 : i32
  }
  func.func @transform_1(%arg0: i32) -> (i32, i32) {
    %c0_i32 = arith.constant 0 : i32
    %c0_i32_0 = arith.constant 0 : i32
    return %arg0, %c0_i32 : i32, i32
  }
  func.func @transform_2(%arg0: i32) -> (i32, i32) {
    %c0_i32 = arith.constant 0 : i32
    %c0_i32_0 = arith.constant 0 : i32
    return %arg0, %c0_i32 : i32, i32
  }
  func.func @transform_3(%arg0: i32) -> (i32, i32) {
    %c0_i32 = arith.constant 0 : i32
    %c0_i32_0 = arith.constant 0 : i32
    return %arg0, %c0_i32 : i32, i32
  }
}

</mosaic_0001>

<bundles_post_ra>
// kernel: tpu_custom_call.1
= control target key start
LH: loop header
LB: loop body
LE: loop exit
PB: predicated region body
PF: predicated region fallthrough
CT: control target
= control target key end

     0   :  { %8 = vsyncpa [#allocation5], 0  ;;  %s200_s0 = inlined_call_operand.hbm [shape: f32[2], index: 0, kind: input, shape index: {}]   ;;  %s201_s1 = inlined_call_operand.hbm [shape: f32[1,2048], index: 1, kind: input, shape index: {}]   ;;  %s202_s2 = inlined_call_operand.hbm [shape: f32[1,2048], index: 2, kind: input, shape index: {}]   ;;  %s203_s3 = inlined_call_operand.hbm [shape: f32[1,2048], index: 3, kind: output, shape index: {}]  }
   0x1   :  { %9 = vsyncpa [#allocation3], 0 }
   0x2   :  { %10 = vsyncpa [#allocation8], 0 }
   0x3   :  { %11 = vsyncpa [#allocation4], 0  ;;  %s164_s12 = smov [#allocation2]   ;;  %s165_s15 = smov [#allocation6]  }
   0x4   :  { %19 = dma.hbm_to_smem %s200_s0, 16, %s164_s12, [#allocation5]  }
   0x5   :  { %s26_s16 = sshll.u32 %s165_s15, 4  ;;  %s166_s17 = smov [#allocation7]   ;;  %s27_s16 = int_to_ptr.vmem [resolvable:$true] %s26_s16 }
   0x6   :  { %s36_s18 = sshll.u32 %s166_s17, 4  ;;  %s104_s19 = scalar_lea.vmem %s27_s16, 256  ;;  %s37_s18 = int_to_ptr.vmem [resolvable:$true] %s36_s18 }
   0x7   :  { %p105_p0 = scmp.ne.s32.totalorder %s27_s16, %s104_s19  ;;  %p109_p1 = scmp.lt.s32.totalorder %s27_s16, %s27_s16 }
   0x8   :  { %p110_p2 = scmp.lt.s32.totalorder %s104_s19, %s104_s19 }
   0xa   :  { %p111_p3 = por %p110_p2, %p109_p1 }
   0xc   :  { %p112_p4 = pnand %p111_p3, %p105_p0 }
   0xe   :  { %115 = shalt.err (!%p112_p4)
}
   0xf   :  { %29 = dma.hbm_to_vmem [thread:$0]  %s201_s1, 256, %s27_s16, [#allocation3]  }
  0x10   :  { %s124_s22 = scalar_lea.vmem %s37_s18, 256  ;;  %p129_p6 = scmp.lt.s32.totalorder %s37_s18, %s37_s18 }
  0x11   :  { %p125_p5 = scmp.ne.s32.totalorder %s37_s18, %s124_s22  ;;  %p130_p7 = scmp.lt.s32.totalorder %s124_s22, %s124_s22 }
  0x13   :  { %p131_p8 = por %p130_p7, %p129_p6 }
  0x15   :  { %p132_p9 = pnand %p131_p8, %p125_p5 }
  0x17   :  { %135 = shalt.err (!%p132_p9)
}
  0x18   :  { %39 = dma.hbm_to_vmem [thread:$0]  %s202_s2, 256, %s37_s18, [#allocation8]  }
  0x19   :  { %156 = dma.done.wait [#allocation5], 16  }
  0x1a   :  { %157 = vsyncadd [#allocation5], 4294967280 }
  0x1b   :  { %158 = dma.done.wait [#allocation3], 256  }
  0x1c   :  { %159 = vsyncadd [#allocation3], 4294967040 }
  0x1d   :  { %160 = dma.done.wait [#allocation8], 256  }
  0x1e   :  { %161 = vsyncadd [#allocation8], 4294967040 }
  0x1f   :  { %49 = sfence }
  0x20   :  { %s50_s1 = sld [smem:[#allocation2]]  ;;  %v52_v0 = vld [vmem:[#allocation6] sm:$0xff]  ;;  %v53_v1 = vld [vmem:[#allocation6 + $0x8] sm:$0xff]  ;;  %v57_v2 = vld [vmem:[#allocation7] sm:$0xff]  ;;  %s167_s25 = smov [#allocation9]  }
  0x21   :  { %s83_s24 = sld [smem:[#allocation2 + $0x1]]  ;;  %v58_v3 = vld [vmem:[#allocation7 + $0x8] sm:$0xff]  ;;  %s72_s26 = sshll.u32 %s167_s25, 4  ;;  %s73_s26 = int_to_ptr.vmem [resolvable:$true] %s72_s26 }
  0x22   :  { %s136_s2 = scalar_lea.vmem %s73_s26, 256  ;;  %p141_p11 = scmp.lt.s32.totalorder %s73_s26, %s73_s26 }
  0x23   :  { %p137_p10 = scmp.ne.s32.totalorder %s73_s26, %s136_s2  ;;  %p142_p12 = scmp.lt.s32.totalorder %s136_s2, %s136_s2 }
  0x25   :  { %p143_p13 = por %p142_p12, %p141_p11 }
  0x26   :  { %v54_v4 = vstv %s50_s1 }
  0x27   :  { %v55_v5 = vmul.f32 %v54_v4, %v52_v0  ;;  %v59_v6 = vstv %s83_s24  ;;  %v56_v7 = vmul.f32 %v54_v4, %v53_v1  ;;  %p144_p0 = pnand %p143_p13, %p137_p10 }
  0x28   :  { %v60_v8 = vmul.f32 %v59_v6, %v57_v2  ;;  %v61_v9 = vmul.f32 %v59_v6, %v58_v3 }
  0x2a   :  { %v62_v10 = vadd.f32 %v60_v8, %v55_v5  ;;  %v63_v11 = vadd.f32 %v61_v9, %v56_v7 }
  0x2c   :  { %64 = vst [vmem:[#allocation9] sm:$0xff] %v62_v10  ;;  %65 = vst [vmem:[#allocation9 + $0x8] sm:$0xff] %v63_v11 }
  0x2d   :  { %147 = shalt.err (!%p144_p0)
}
  0x2e   :  { %75 = dma.vmem_to_hbm [thread:$0]  %s73_s26, 256, %s203_s3, [#allocation4]  }
  0x2f   :  { %162 = dma.done.wait [#allocation4], 256  }
  0x30   :  { %163 = vsyncadd [#allocation4], 4294967040 }
  0x31   :  { %79 = vsyncpa [#allocation3], 1 }
  0x32   :  { %80 = vsyncpa [#allocation8], 1 }
  0x33   :  { %81 = vsyncpa [#allocation4], 1 }
  0x34   :  { %82 = vsyncpa [#allocation5], 1 }

</bundles_post_ra>
